<compile_context>
chip_gen: v6e
topology: v6e:2x2x1
jax: 0.10.0
libtpu: 0.0.40
codegen_flags: <defaults>
</compile_context>

<pallas_src>
import jax
import jax.numpy as jnp
from jax.experimental import pallas as pl
from jax.experimental.pallas import tpu as pltpu


# ---------------------------------------------------------------------------
# Kernels
# ---------------------------------------------------------------------------
def _silu_mul(gate, up, out_dtype):
    """SiLU(gate) * up computed in f32 (matches torch f32 internal math)."""
    g = gate.astype(jnp.float32)
    u = up.astype(jnp.float32)
    return (g * jax.nn.sigmoid(g) * u).astype(out_dtype)


def _glu_silu_split_kernel(gate_ref, up_ref, o_ref):
    """gate/up arrive as separate full-width, lane-aligned tiles."""
    o_ref[...] = _silu_mul(gate_ref[...], up_ref[...], o_ref.dtype)


def _glu_silu_fused_kernel(x_ref, o_ref):
    """Fallback (H % 128 != 0): one [row_tile, 2H] block, static slices."""
    # TODO(synk): once verified on all gens, deliver the halves via a
    # (rows, 2, H) metadata reshape + squeezed-middle BlockSpecs to avoid the
    # in-kernel relayout of the non-lane-aligned `up` slice.
    x = x_ref[...]
    h = x.shape[-1] // 2
    o_ref[...] = _silu_mul(x[:, :h], x[:, h:], o_ref.dtype)


# ---------------------------------------------------------------------------
# Wrapper
# ---------------------------------------------------------------------------
def _round_up(x: int, m: int) -> int:
    return ((x + m - 1) // m) * m


def glu_activation(
    merged_states: jax.Array,
    *,
    step_bytes_target: int = 12 * 1024 * 1024,  # per-grid-step DMA bytes
    row_tile_cap: int = 4096,
) -> jax.Array:
    """Pallas GLU: split last dim in half, SiLU(gate) * up."""
    *lead, two_h = merged_states.shape
    assert two_h % 2 == 0, "last dim must be even"
    h = two_h // 2

    rows = 1
    for d in lead:
        rows *= d
    x2d = merged_states.reshape(rows, two_h)

    dtype = merged_states.dtype
    itemsize = jnp.dtype(dtype).itemsize
    # Native sublane packing: 8 for 32-bit, 16 for bf16/fp16, 32 for 8-bit.
    pack = max(8, 32 // itemsize)

    # Bytes moved per row per step: gate in + up in + out = 3H * itemsize.
    per_row_bytes = 3 * h * itemsize
    row_tile = step_bytes_target // per_row_bytes
    row_tile = max(pack, (row_tile // pack) * pack)
    row_tile = min(row_tile, row_tile_cap, _round_up(rows, pack))
    # Keep >=2 parallel row blocks when possible (v7x has 2 TensorCores).
    if pl.cdiv(rows, row_tile) < 2 and rows > pack:
        row_tile = _round_up(pl.cdiv(rows, 2), pack)
    grid_rows = pl.cdiv(rows, row_tile)  # partial last block is masked

    compiler_params = pltpu.CompilerParams(
        dimension_semantics=("parallel",),
        vmem_limit_bytes=48 * 1024 * 1024,
    )

    if h % 128 == 0:
        # Split path: x2d passed twice; gate = column block 0, up = block 1.
        out2d = pl.pallas_call(
            _glu_silu_split_kernel,
            out_shape=jax.ShapeDtypeStruct((rows, h), dtype),
            grid_spec=pltpu.PrefetchScalarGridSpec(
                num_scalar_prefetch=0,
                grid=(grid_rows,),
                in_specs=[
                    pl.BlockSpec((row_tile, h), lambda i: (i, 0)),  # gate half
                    pl.BlockSpec((row_tile, h), lambda i: (i, 1)),  # up half
                ],
                out_specs=pl.BlockSpec((row_tile, h), lambda i: (i, 0)),
            ),
            compiler_params=compiler_params,
        )(x2d, x2d)
    else:
        # Fallback: fused block covering the full (even, possibly <128) width.
        out2d = pl.pallas_call(
            _glu_silu_fused_kernel,
            out_shape=jax.ShapeDtypeStruct((rows, h), dtype),
            grid_spec=pltpu.PrefetchScalarGridSpec(
                num_scalar_prefetch=0,
                grid=(grid_rows,),
                in_specs=[pl.BlockSpec((row_tile, two_h), lambda i: (i, 0))],
                out_specs=pl.BlockSpec((row_tile, h), lambda i: (i, 0)),
            ),
            compiler_params=compiler_params,
        )(x2d)

    return out2d.reshape(*lead, h)


# ---------------------------------------------------------------------------
# Reference & test
# ---------------------------------------------------------------------------
def _reference(merged_states: jax.Array) -> jax.Array:
    h = merged_states.shape[-1] // 2
    gate = merged_states[..., :h].astype(jnp.float32)
    up = merged_states[..., h:].astype(jnp.float32)
    return (jax.nn.silu(gate) * up).astype(merged_states.dtype)


if __name__ == "__main__":
    key = jax.random.PRNGKey(0)
    k1, k2, k3 = jax.random.split(key, 3)

    # Test 1: small module-consistent shape (batch=2, seq=8, hidden=32)
    # -> exercises the fused fallback path (H not a multiple of 128).
    b1, s1, h1 = 2, 8, 32
    x1 = jax.random.normal(k1, (b1, s1, 2 * h1), dtype=jnp.float32)
    out1 = jax.block_until_ready(glu_activation(x1))
    ref1 = _reference(x1)
    assert out1.shape == (b1, s1, h1), out1.shape
    assert jnp.allclose(out1, ref1, atol=1e-5, rtol=1e-5), "mismatch (fused path)"

    # Test 2: ragged row count + 128-aligned hidden
    # -> split path, partial last row block (no pad / slice around the call).
    b2, s2, h2 = 3, 5, 128
    x2 = jax.random.normal(k2, (b2, s2, 2 * h2), dtype=jnp.float32)
    out2 = jax.block_until_ready(glu_activation(x2))
    ref2 = _reference(x2)
    assert out2.shape == (b2, s2, h2), out2.shape
    assert jnp.allclose(out2, ref2, atol=1e-5, rtol=1e-5), "mismatch (split path)"

    # Test 3: bf16 split path (sublane packing = 16, f32 internal math).
    b3, s3, h3 = 4, 16, 128
    x3 = jax.random.normal(k3, (b3, s3, 2 * h3), dtype=jnp.float32).astype(jnp.bfloat16)
    out3 = jax.block_until_ready(glu_activation(x3))
    ref3 = _reference(x3)
    assert out3.shape == (b3, s3, h3), out3.shape
    assert jnp.allclose(out3.astype(jnp.float32), ref3.astype(jnp.float32),
                        atol=1e-2, rtol=1e-2), "mismatch (bf16 path)"

    print("KERNEL_OK")
</pallas_src>

<mosaic_0001>
module attributes {stable_mosaic.version = 11 : i64} {
  func.func @_glu_silu_fused_kernel(%arg0: i32, %arg1: memref<8x64xf32, #tpu.memory_space<vmem>>, %arg2: memref<8x32xf32, #tpu.memory_space<vmem>>) attributes {dimension_semantics = [#tpu.dimension_semantics<parallel>], iteration_bounds = array<i64: 2>, scalar_prefetch = 0 : i64, scratch_operands = 0 : i64, tpu.core_type = #tpu.core_type<tc>, window_params = [{transform_indices = @transform_0, window_bounds = array<i64: 8, 64>}, {transform_indices = @transform_1, window_bounds = array<i64: 8, 32>}]} {
    %c0 = arith.constant 0 : index
    %c0_0 = arith.constant 0 : index
    %0 = vector.load %arg1[%c0, %c0_0] : memref<8x64xf32, #tpu.memory_space<vmem>>, vector<8x64xf32>
    %1 = vector.extract_strided_slice %0 {offsets = [0, 0], sizes = [8, 32], strides = [1, 1]} : vector<8x64xf32> to vector<8x32xf32>
    %2 = vector.extract_strided_slice %0 {offsets = [0, 32], sizes = [8, 32], strides = [1, 1]} : vector<8x64xf32> to vector<8x32xf32>
    %3 = arith.negf %1 : vector<8x32xf32>
    %4 = math.exp %3 : vector<8x32xf32>
    %cst = arith.constant 1.000000e+00 : f32
    %5 = vector.broadcast %cst : f32 to vector<8x32xf32>
    %6 = arith.addf %5, %4 : vector<8x32xf32>
    %7 = arith.divf %5, %6 : vector<8x32xf32>
    %8 = arith.mulf %1, %7 : vector<8x32xf32>
    %9 = arith.mulf %8, %2 : vector<8x32xf32>
    %c0_1 = arith.constant 0 : index
    %c0_2 = arith.constant 0 : index
    %10 = vector.load %arg2[%c0_1, %c0_2] : memref<8x32xf32, #tpu.memory_space<vmem>>, vector<8x32xf32>
    tpu.vector_store %arg2[%c0_1, %c0_2], %9 {strides = array<i32>} : memref<8x32xf32, #tpu.memory_space<vmem>>, vector<8x32xf32>,
    return
  }
  func.func @transform_0(%arg0: i32) -> (i32, i32) {
    %c0_i32 = arith.constant 0 : i32
    %c0_i32_0 = arith.constant 0 : i32
    return %arg0, %c0_i32 : i32, i32
  }
  func.func @transform_1(%arg0: i32) -> (i32, i32) {
    %c0_i32 = arith.constant 0 : i32
    %c0_i32_0 = arith.constant 0 : i32
    return %arg0, %c0_i32 : i32, i32
  }
}

</mosaic_0001>

<bundles_post_ra>
// kernel: tpu_custom_call.1
= control target key start
LH: loop header
LB: loop body
LE: loop exit
PB: predicated region body
PF: predicated region fallthrough
CT: control target
= control target key end

     0   :  { %6 = vsyncpa [#allocation3], 0  ;;  %s543_s0 = inlined_call_operand.hbm [shape: f32[16,64], index: 0, kind: input, shape index: {}]   ;;  %s544_s1 = inlined_call_operand.hbm [shape: f32[16,32], index: 1, kind: output, shape index: {}]  }
   0x1   :  { %8 = vsyncpa [#allocation3 + $0x1], 0 }
   0x2   :  { %9 = vsyncpa [#allocation4], 0 }
   0x3   :  { %11 = vsyncpa [#allocation4 + $0x1], 0  ;;  %s402_s6 = smov 0   ;;  %s404_s7 = smov 0  }
   0x4   :  { %s406_s8 = smov 0   ;;  %s408_s9 = smov 0  }
   0x5 LB: > { %s423_s10 = sadd.s32 4294967295, %s387_s9   ;;  %s231_s11 = sadd.s32 4294967294, %s387_s9   ;;  %s387_s9 = sphi %s408_s9, %s561_s9   ;;  %s383_s8 = sphi %s406_s8, %s560_s8   ;;  %s379_s7 = sphi %s404_s7, %s559_s7   ;;  %s375_s6 = sphi %s402_s6, %s558_s6  }
   0x6   : > { %s427_s12 = sadd.s32 1, %s387_s9   ;;  %s24_s13 = sadd.s32 1, %s383_s8 }
   0x7   : > { %s21_s14 = ssub.s32 %s387_s9, %s427_s12  ;;  %p31_p0 = scmp.ne.s32.totalorder %s383_s8, %s379_s7 }
   0x8   : > { %p22_p1 = scmp.eq.s32.totalorder %s21_s14, 0  ;;  %p32_p2 = scmp.eq.s32.totalorder %s387_s9, 0 }
   0x9   : > { %p37_p3 = scmp.ne.s32.totalorder %s379_s7, %s375_s6  ;;  %p38_p4 = scmp.eq.s32.totalorder %s423_s10, 0 }
   0xa   : > { %s439_s15 = scalar_select %p22_p1, %s383_s8, %s24_s13  }
   0xb   : > { %p441_p5 = por %p32_p2, %p31_p0  ;;  %p445_p6 = por %p38_p4, %p37_p3 }
   0xc   : > { %p61_p7 = scmp.eq.s32.totalorder %s423_s10, 1  ;;  %p67_p8 = scmp.eq.s32.totalorder %s231_s11, 1 }
   0xd   : > { %s548_s17 = scalar_select %p445_p6, 1, 0 }
   0xe   : > { %p256_p10 = scmp.lt.s32.totalorder %s387_s9, 2  ;;  %p452_p11 = por %p61_p7, %p31_p0 }
   0xf   : > { %p456_p12 = por %p67_p8, %p37_p3  ;;  %s87_s20 = sand.u32 1, %s383_s8  }
  0x10   : > { %s549_s18 = scalar_select %p452_p11, 1, 0 }
  0x11   : > { %s550_s19 = scalar_select %p456_p12, 1, 0 }
  0x12   : > { %s235_s21 = sshll.u32 %s387_s9, 7  ;;  %s234_s22 = sshll.u32 %s87_s20, 3 }
  0x13   : > { %s465_s25 = scalar_lea.hbm %s543_s0, %s235_s21  ;;  %s91_s26 = scalar_lea.vmem [#allocation2], %s234_s22 }
  0x14   : > { %s98_s27 = sshll.u32 %s91_s26, 4  ;;  %p469_p13 = pnand %p256_p10, %p441_p5  ;;  %s473_s27 = int_to_ptr.vmem [resolvable:$true] %s98_s27 }
  0x15   : > { %s88_s29 = scalar_lea.sflag [#allocation3], %s87_s20  ;;  %s295_s30 = scalar_lea.hbm %s465_s25, 128 }
  0x16   : > { %p296_p2 = scmp.ne.s32.totalorder %s465_s25, %s295_s30  ;;  %p297_p3 = pneg %p469_p13 }
  0x17   : > { %s300_s4 = scalar_lea.hbm %s543_s0, 256  ;;  %p301_p5 = scmp.lt.s32.totalorder %s465_s25, %s543_s0 }
  0x18   : > { %p298_p4 = pnand %p297_p3, %p296_p2  ;;  %p302_p8 = scmp.lt.s32.totalorder %s300_s4, %s295_s30 }
  0x1a   : > { %p299_p7 = pneg %p298_p4  ;;  %p303_p10 = por %p302_p8, %p301_p5 }
  0x1c   : > { %p304_p9 = pnand %p303_p10, %p299_p7 }
  0x1e   : > { %307 = shalt.err (!%p304_p9)
}
  0x1f   : > { %s308_s13 = scalar_lea.vmem %s473_s27, 128  ;;  %s389_s14 = smov [#allocation2]  }
  0x20   : > { %p309_p0 = scmp.ne.s32.totalorder %s473_s27, %s308_s13  ;;  %s313_s16 = sshll.u32 %s389_s14, 4  ;;  %s314_s16 = int_to_ptr.vmem [resolvable:$false] %s313_s16 }
  0x21   : > { %s315_s20 = scalar_lea.vmem %s314_s16, 256  ;;  %p316_p4 = scmp.lt.s32.totalorder %s473_s27, %s314_s16 }
  0x22   : > { %p311_p1 = pnand %p309_p0, %p297_p3  ;;  %p317_p12 = scmp.lt.s32.totalorder %s315_s20, %s308_s13 }
  0x24   : > { %p312_p2 = pneg %p311_p1  ;;  %p318_p11 = por %p317_p12, %p316_p4 }
  0x26   : > { %p319_p6 = pnand %p318_p11, %p312_p2 }
  0x28   : > { %322 = shalt.err (!%p319_p6)
}
  0x29   : > { %251 = dma.hbm_to_vmem [thread:$0]  (!%p469_p13), %s465_s25, 128, %s473_s27, %s88_s29  }
  0x2a   : > { %p552_p9 = scmp.lt.s32.totalorder %s387_s9, 3  ;;  %p553_p7 = scmp.ge.s32.totalorder %s387_s9, 1 }
  0x2c   : > { %p104_p0 = pnand %p553_p7, %p552_p9 }
  0x2d   : > { %s500_s21 = sand.u32 (!%p104_p0), 1, %s379_s7   ;;  %p554_p6 = scmp.ne.s32.totalorder (!%p104_p0), %s548_s17, 0 }
  0x2e   : > { %107 = sbr.rel (%p104_p0) target bundleno = 183 (0xb7), region = 24  ;;  %s237_s22 = sshll.u32 (!%p104_p0), %s500_s21, 3 }
  0x2f   : > { %s110_s23 = scalar_lea.sflag (!%p104_p0), [#allocation3], %s500_s21  ;;  %s113_s24 = scalar_lea.vmem (!%p104_p0), [#allocation2], %s237_s22 }
  0x33   : > { %366 = dma.done.wait (%p554_p6), %s110_s23, 128  }
  0x34   : > { %368 = vsyncadd (%p554_p6), %s110_s23, 4294967168  ;;  %v132_v0 = vld [vmem:[%s113_s24] sm:$0xff]  ;;  %s390_s25 = smov 96   ;;  %s241_s26 = sshll.u32 %s423_s10, 7  ;;  %vm145_vm0 = vcmask 261120  }
  0x35   : > { %141 = vrot.lane.b32.xlu0 %v132_v0, %s390_s25  ;;  %v239_v1 = vmul.f32 -1.442695, %v132_v0  ;;  %s131_s27 = scalar_lea.vmem [#allocation5], %s237_s22  ;;  %s159_s30 = scalar_lea.hbm %s544_s1, %s241_s26 }
  0x36   : > { %s161_s28 = sshll.u32 %s131_s27, 4  ;;  %s148_s2 = scalar_lea.sflag [#allocation4], %s500_s21  ;;  %s162_s28 = int_to_ptr.vmem [resolvable:$true] %s161_s28 }
  0x37   : > { %291 = vpow2.f32 %v239_v1  ;;  %s323_s3 = scalar_lea.vmem %s162_s28, 128  ;;  %p555_p12 = scmp.ne.s32.totalorder %s549_s18, 0 }
  0x38   : > { %p324_p11 = scmp.ne.s32.totalorder %s162_s28, %s323_s3  ;;  %s391_s4 = smov [#allocation5]  }
  0x39   : > { %s327_s5 = sshll.u32 %s391_s4, 4  ;;  %s328_s5 = int_to_ptr.vmem [resolvable:$false] %s327_s5 }
  0x3a   : > { %p325_p13 = pnand %p324_p11, %p555_p12  ;;  %s329_s10 = scalar_lea.vmem %s328_s5, 256 }
  0x3b   : > { %p330_p3 = scmp.lt.s32.totalorder %s162_s28, %s328_s5  ;;  %p331_p5 = scmp.lt.s32.totalorder %s329_s10, %s323_s3 }
  0x3c   : > { %p326_p1 = pneg %p325_p13 }
  0x3d   : > { %p332_p8 = por %p331_p5, %p330_p3 }
  0x3f   : > { %p333_p10 = pnand %p332_p8, %p326_p1 }
  0x44   : > { %v292_v2 = vpop.eup %291 }
  0x45   : > { %v136_v3 = vadd.f32 1.0, %v292_v2 }
  0x47   : > { %293 = vrcp.f32 %v136_v3 }
  0x54   : > { %v294_v4 = vpop.eup %293 }
  0x55   : > { %v139_v5 = vmul.f32 %v294_v4, %v132_v0 }
  0xa7   : > { %v142_v6 = vpop.permute.xlu0 %141 }
  0xa8   : > { %v144_v7 = vmul.f32 %v142_v6, %v139_v5 }
  0xaa   : > { %146 = vst.msk [vmem:[%s131_s27] sm:$0xff] %vm145_vm0, %v144_v7 }
  0xab   : > { %336 = shalt.err (!%p333_p10)
}
  0xac   : > { %s337_s11 = scalar_lea.hbm %s159_s30, 128  ;;  %s341_s16 = scalar_lea.hbm %s544_s1, 256 }
  0xad   : > { %p338_p2 = scmp.ne.s32.totalorder %s159_s30, %s337_s11  ;;  %p342_p7 = scmp.lt.s32.totalorder %s159_s30, %s544_s1 }
  0xae   : > { %p343_p0 = scmp.lt.s32.totalorder %s341_s16, %s337_s11 }
  0xaf   : > { %p339_p4 = pnand %p338_p2, %p555_p12 }
  0xb0   : > { %p344_p6 = por %p343_p0, %p342_p7 }
  0xb1   : > { %p340_p9 = pneg %p339_p4 }
  0xb3   : > { %p345_p11 = pnand %p344_p6, %p340_p9 }
  0xb5   : > { %348 = shalt.err (!%p345_p11)
}
  0xb6   : > { %246 = dma.vmem_to_hbm [thread:$0]  (%p555_p12), %s162_s28, 128, %s159_s30, %s148_s2  }
  0xb7 PF: > { %s173_s22 = sand.u32 1, %s375_s6   ;;  %p556_p13 = scmp.ne.s32.totalorder %s550_s19, 0 }
  0xb8   : > { %p557_p1 = scmp.ge.s32.totalorder %s387_s9, 2  ;;  %s174_s23 = scalar_lea.sflag [#allocation4], %s173_s22 }
  0xba   : > { %p253_p3 = pnand %p557_p1, %p556_p13 }
  0xbc   : > { %p254_p5 = pneg %p253_p3 }
  0xbe   : > { %370 = dma.done.wait (%p254_p5), %s174_s23, 128  }
  0xbf   : > { %372 = vsyncadd (%p254_p5), %s174_s23, 4294967168  ;;  %p14_p8 = scmp.ge.s32.totalorder %s427_s12, 4   ;;  %s558_s6 = smov %s379_s7 }
  0xc0   : > { %s559_s7 = smov %s383_s8  ;;  %s560_s8 = smov %s439_s15 }
  0xc1   : > { %s561_s9 = smov %s427_s12  ;;  %16 = sbr.rel (!%p14_p8) target bundleno = 5 (0x5), region = 69 }
  0xc6   :  { %179 = vsyncpa [#allocation3], 1 }
  0xc7   :  { %181 = vsyncpa [#allocation3 + $0x1], 1 }
  0xc8   :  { %182 = vsyncpa [#allocation4], 1 }
  0xc9   :  { %184 = vsyncpa [#allocation4 + $0x1], 1 }

</bundles_post_ra>
